<compile_context>
chip_gen: v6e
topology: v6e:2x2x1
jax: 0.10.0
libtpu: 0.0.40
codegen_flags: <defaults>
</compile_context>

<pallas_src>
import functools

import jax
import jax.numpy as jnp
from jax.experimental import pallas as pl
from jax.experimental.pallas import tpu as pltpu

EPS = 1e-5  # nn.LayerNorm default


# --------------------------------------------------------------------------- helpers
def _round_up(n, m):
    return ((n + m - 1) // m) * m


def _tpu_info():
    """(vmem_capacity_bytes, num_tensorcores) with conservative fallbacks."""
    vmem = 64 * 1024 * 1024  # v7x-sized fallback
    cores = 1
    try:
        info = pltpu.get_tpu_info()
        vmem = int(getattr(info, "vmem_capacity_bytes", vmem))
        for name in ("num_cores", "num_tensorcores", "tensorcores_per_chip",
                     "cores_per_chip"):
            v = getattr(info, name, None)
            if v:
                cores = int(v)
                break
    except Exception:
        pass
    return vmem, cores


def _choose_row_tile(rows, d, itemsize, n_streamed, resident_bytes, tile_budget,
                     num_cores):
    """Largest row tile fitting the VMEM budget, capped by per-step bytes."""
    sub = 16 if itemsize < 4 else 8                       # sublane packing (bf16 vs f32)
    # streamed I/O is double-buffered; f32 temporaries (z, zc, pre-cast out) single-buffered
    per_row = n_streamed * 2 * d * itemsize + 3 * d * 4
    avail = max(tile_budget - resident_bytes, per_row * sub)
    tile = max(sub, (avail // per_row) // sub * sub)
    # bytes-based cap (~8 MiB per streamed block): per-step HBM time >> 0.35us step cost
    cap_rows = max(sub, ((8 * 1024 * 1024) // (d * itemsize)) // sub * sub)
    tile = min(tile, cap_rows, _round_up(rows, sub))
    if num_cores >= 2:
        # v7x megacore: keep >= 2 grid steps per TensorCore so both cores get work.
        tile = max(sub, min(tile, _round_up(pl.cdiv(rows, 2 * num_cores), sub)))
    return int(tile)


def _pad_last(a, d_pad):
    d = a.shape[-1]
    if d == d_pad:
        return a
    pad = [(0, 0)] * (a.ndim - 1) + [(0, d_pad - d)]
    return jnp.pad(a, pad)


def _layernorm_store(z, params_ref, o_ref, d_valid):
    """z: (rows, Dp) f32 (padded lanes, if any, are zero). params_ref: [gamma; beta]."""
    d_padded = z.shape[-1]
    inv_d = 1.0 / d_valid
    mean = jnp.sum(z, axis=-1, keepdims=True) * inv_d     # padded lanes contribute 0
    zc = z - mean
    if d_padded != d_valid:                               # static (trace-time) branch
        lane = jax.lax.broadcasted_iota(jnp.int32, z.shape, z.ndim - 1)
        zc = jnp.where(lane < d_valid, zc, 0.0)
    var = jnp.sum(zc * zc, axis=-1, keepdims=True) * inv_d  # two-pass, biased (torch)
    inv = jax.lax.rsqrt(var + EPS)
    gamma = params_ref[0:1, :].astype(jnp.float32)
    beta = params_ref[1:2, :].astype(jnp.float32)
    o_ref[...] = (zc * inv * gamma + beta).astype(o_ref.dtype)


# --------------------------------------------------------------------------- kernels
def addnorm_kernel(x_ref, y_ref, params_ref, o_ref, *, d_valid):
    z = x_ref[...].astype(jnp.float32) + y_ref[...].astype(jnp.float32)
    _layernorm_store(z, params_ref, o_ref, d_valid)


def addnorm_fused_kernel(x_ref, w_ref, params_ref, o_ref, *, d_valid):
    x = x_ref[...]
    # Linear sublayer on the MXU: bf16 operands, f32 accumulation (single-pass).
    y = jnp.dot(x.astype(jnp.bfloat16), w_ref[...],
                preferred_element_type=jnp.float32)
    z = x.astype(jnp.float32) + y
    _layernorm_store(z, params_ref, o_ref, d_valid)


# --------------------------------------------------------------------------- wrappers
def add_norm(x, y, gamma, beta, *, row_tile=None):
    """LayerNorm(x + y) over the last axis.  x, y: [..., D]; gamma, beta: [D]."""
    orig_shape = x.shape
    D = x.shape[-1]
    rows = 1
    for s in x.shape[:-1]:
        rows *= s
    Dp = _round_up(D, 128)                                # lane-dense I/O
    itemsize = jnp.dtype(x.dtype).itemsize

    vmem_cap, num_cores = _tpu_info()
    vmem_limit = int(0.75 * vmem_cap)
    if row_tile is None:
        row_tile = _choose_row_tile(rows, Dp, itemsize, n_streamed=3,
                                    resident_bytes=2 * Dp * 4,
                                    tile_budget=int(0.7 * vmem_limit),
                                    num_cores=num_cores)

    x2 = _pad_last(x.reshape(rows, D), Dp)
    y2 = _pad_last(y.reshape(rows, D), Dp)
    params = _pad_last(jnp.stack([gamma, beta]), Dp)      # (2, Dp), fetched once

    # y is read once per block and never needed again -> alias it to the output.
    aliases = {1: 0} if y.dtype == x.dtype else {}

    out2 = pl.pallas_call(
        functools.partial(addnorm_kernel, d_valid=D),
        out_shape=jax.ShapeDtypeStruct((rows, Dp), x.dtype),
        grid_spec=pltpu.PrefetchScalarGridSpec(
            num_scalar_prefetch=0,
            grid=(pl.cdiv(rows, row_tile),),
            in_specs=[
                pl.BlockSpec((row_tile, Dp), lambda i: (i, 0)),
                pl.BlockSpec((row_tile, Dp), lambda i: (i, 0)),
                pl.BlockSpec((2, Dp), lambda i: (0, 0)),
            ],
            out_specs=pl.BlockSpec((row_tile, Dp), lambda i: (i, 0)),
        ),
        compiler_params=pltpu.CompilerParams(
            dimension_semantics=("parallel",),
            vmem_limit_bytes=vmem_limit),
        input_output_aliases=aliases,
    )(x2, y2, params)
    if Dp != D:
        out2 = out2[:, :D]
    return out2.reshape(orig_shape)


def add_norm_fused(x, W, gamma, beta, *, row_tile=None):
    """LayerNorm(x + x @ W) with the linear sublayer fused into the kernel.
    x: [..., D]; W: [D, D]; gamma, beta: [D]."""
    orig_shape = x.shape
    D = x.shape[-1]
    rows = 1
    for s in x.shape[:-1]:
        rows *= s
    Dp = _round_up(D, 128)
    itemsize = jnp.dtype(x.dtype).itemsize

    vmem_cap, num_cores = _tpu_info()
    vmem_limit = int(0.75 * vmem_cap)
    w_bytes = Dp * Dp * 2                                 # W kept resident as bf16

    if w_bytes > vmem_limit // 2:
        # W too big to stay resident (e.g. large D on v7x's 64 MiB VMEM):
        # fall back to the generic streaming path.
        # TODO(synk): add an N-tiled second grid axis (W BlockSpec (Dp, tn)) instead.
        y = jnp.einsum("...d,de->...e", x, W)
        return add_norm(x, y, gamma, beta, row_tile=row_tile)

    if row_tile is None:
        row_tile = _choose_row_tile(rows, Dp, itemsize, n_streamed=2,
                                    resident_bytes=w_bytes + 2 * Dp * 4,
                                    tile_budget=int(0.7 * vmem_limit),
                                    num_cores=num_cores)

    x2 = _pad_last(x.reshape(rows, D), Dp)
    Wp = W if Dp == D else jnp.pad(W, ((0, Dp - D), (0, Dp - D)))
    Wp = Wp.astype(jnp.bfloat16)
    params = _pad_last(jnp.stack([gamma, beta]), Dp)

    out2 = pl.pallas_call(
        functools.partial(addnorm_fused_kernel, d_valid=D),
        out_shape=jax.ShapeDtypeStruct((rows, Dp), x.dtype),
        grid_spec=pltpu.PrefetchScalarGridSpec(
            num_scalar_prefetch=0,
            grid=(pl.cdiv(rows, row_tile),),
            in_specs=[
                pl.BlockSpec((row_tile, Dp), lambda i: (i, 0)),
                pl.BlockSpec((Dp, Dp), lambda i: (0, 0)),   # W resident, fetched once
                pl.BlockSpec((2, Dp), lambda i: (0, 0)),
            ],
            out_specs=pl.BlockSpec((row_tile, Dp), lambda i: (i, 0)),
        ),
        compiler_params=pltpu.CompilerParams(
            dimension_semantics=("parallel",),
            vmem_limit_bytes=vmem_limit),
    )(x2, Wp, params)
    if Dp != D:
        out2 = out2[:, :D]
    return out2.reshape(orig_shape)


# --------------------------------------------------------------------------- demo / check
if __name__ == "__main__":
    key = jax.random.PRNGKey(0)
    k = jax.random.split(key, 8)
    B, S, D = 2, 8, 128  # d_model multiple of 128 => no padding path

    x = jax.random.normal(k[0], (B, S, D), dtype=jnp.float32)
    W = jax.random.normal(k[1], (D, D), dtype=jnp.float32) * 0.05
    gamma = 1.0 + 0.1 * jax.random.normal(k[2], (D,), dtype=jnp.float32)
    beta = 0.1 * jax.random.normal(k[3], (D,), dtype=jnp.float32)

    def ref_addnorm(x, y, g, b):
        z = x + y
        mu = jnp.mean(z, axis=-1, keepdims=True)
        var = jnp.mean((z - mu) ** 2, axis=-1, keepdims=True)
        return (z - mu) / jnp.sqrt(var + EPS) * g + b

    # Deterministic "sublayer": a linear map (plain-JAX glue for the generic path).
    y = jnp.einsum("bsd,de->bse", x, W, precision=jax.lax.Precision.HIGHEST)
    ref = ref_addnorm(x, y, gamma, beta)

    # Path A: generic sublayer output passed in.
    out_a = jax.block_until_ready(add_norm(x, y, gamma, beta))
    assert jnp.max(jnp.abs(out_a - ref)) < 1e-4, "generic path mismatch"

    # Path B: fused linear sublayer (bf16 MXU, f32 accumulation -> looser tolerance;
    # this is expected rounding, not a bug).
    out_b = jax.block_until_ready(add_norm_fused(x, W, gamma, beta))
    assert jnp.max(jnp.abs(out_b - ref)) < 1e-2, "fused path mismatch"

    # Path C: d_model not a multiple of 128 -> wrapper pads to lane-dense stores and
    # masks the variance reduction to the valid width.
    D2 = 96
    x3 = jax.random.normal(k[4], (1, 8, D2), dtype=jnp.float32)
    y3 = jax.random.normal(k[5], (1, 8, D2), dtype=jnp.float32)
    g3 = 1.0 + 0.1 * jax.random.normal(k[6], (D2,), dtype=jnp.float32)
    b3 = 0.1 * jax.random.normal(k[7], (D2,), dtype=jnp.float32)
    ref3 = ref_addnorm(x3, y3, g3, b3)
    out_c = jax.block_until_ready(add_norm(x3, y3, g3, b3))
    assert jnp.max(jnp.abs(out_c - ref3)) < 1e-4, "padded-D path mismatch"

    print("KERNEL_OK")
</pallas_src>

<mosaic_0001>
module attributes {stable_mosaic.version = 11 : i64} {
  func.func @addnorm_kernel(%arg0: i32, %arg1: memref<16x128xf32, #tpu.memory_space<vmem>>, %arg2: memref<16x128xf32, #tpu.memory_space<vmem>>, %arg3: memref<2x128xf32, #tpu.memory_space<vmem>>, %arg4: memref<16x128xf32, #tpu.memory_space<vmem>>) attributes {dimension_semantics = [#tpu.dimension_semantics<parallel>], iteration_bounds = array<i64: 1>, scalar_prefetch = 0 : i64, scratch_operands = 0 : i64, tpu.core_type = #tpu.core_type<tc>, window_params = [{transform_indices = @transform_0, window_bounds = array<i64: 16, 128>}, {transform_indices = @transform_1, window_bounds = array<i64: 16, 128>}, {pipeline_mode = #tpu.pipeline_mode<synchronous>, transform_indices = @transform_2, window_bounds = array<i64: 2, 128>}, {transform_indices = @transform_3, window_bounds = array<i64: 16, 128>}]} {
    %c0 = arith.constant 0 : index
    %c0_0 = arith.constant 0 : index
    %0 = vector.load %arg1[%c0, %c0_0] : memref<16x128xf32, #tpu.memory_space<vmem>>, vector<16x128xf32>
    %c0_1 = arith.constant 0 : index
    %c0_2 = arith.constant 0 : index
    %1 = vector.load %arg2[%c0_1, %c0_2] : memref<16x128xf32, #tpu.memory_space<vmem>>, vector<16x128xf32>
    %2 = arith.addf %0, %1 : vector<16x128xf32>
    %cst = arith.constant dense<0.000000e+00> : vector<16xf32>
    %3 = vector.multi_reduction <add>, %2, %cst [1] : vector<16x128xf32> to vector<16xf32>
    %4 = vector.shape_cast %3 : vector<16xf32> to vector<16x1xf32>
    %cst_3 = arith.constant 7.812500e-03 : f32
    %5 = vector.broadcast %cst_3 : f32 to vector<16x1xf32>
    %6 = arith.mulf %4, %5 : vector<16x1xf32>
    %7 = vector.broadcast %6 : vector<16x1xf32> to vector<16x128xf32>
    %8 = arith.subf %2, %7 : vector<16x128xf32>
    %9 = arith.mulf %8, %8 : vector<16x128xf32>
    %cst_4 = arith.constant dense<0.000000e+00> : vector<16xf32>
    %10 = vector.multi_reduction <add>, %9, %cst_4 [1] : vector<16x128xf32> to vector<16xf32>
    %11 = vector.shape_cast %10 : vector<16xf32> to vector<16x1xf32>
    %cst_5 = arith.constant 7.812500e-03 : f32
    %12 = vector.broadcast %cst_5 : f32 to vector<16x1xf32>
    %13 = arith.mulf %11, %12 : vector<16x1xf32>
    %cst_6 = arith.constant 9.99999974E-6 : f32
    %14 = vector.broadcast %cst_6 : f32 to vector<16x1xf32>
    %15 = arith.addf %13, %14 : vector<16x1xf32>
    %16 = math.rsqrt %15 : vector<16x1xf32>
    %c0_7 = arith.constant 0 : index
    %c0_8 = arith.constant 0 : index
    %17 = vector.load %arg3[%c0_7, %c0_8] : memref<2x128xf32, #tpu.memory_space<vmem>>, vector<1x128xf32>
    %c1 = arith.constant 1 : index
    %c0_9 = arith.constant 0 : index
    %18 = vector.load %arg3[%c1, %c0_9] : memref<2x128xf32, #tpu.memory_space<vmem>>, vector<1x128xf32>
    %19 = vector.broadcast %16 : vector<16x1xf32> to vector<16x128xf32>
    %20 = arith.mulf %8, %19 : vector<16x128xf32>
    %21 = vector.broadcast %17 : vector<1x128xf32> to vector<16x128xf32>
    %22 = arith.mulf %20, %21 : vector<16x128xf32>
    %23 = vector.broadcast %18 : vector<1x128xf32> to vector<16x128xf32>
    %24 = arith.addf %22, %23 : vector<16x128xf32>
    %c0_10 = arith.constant 0 : index
    %c0_11 = arith.constant 0 : index
    %25 = vector.load %arg4[%c0_10, %c0_11] : memref<16x128xf32, #tpu.memory_space<vmem>>, vector<16x128xf32>
    tpu.vector_store %arg4[%c0_10, %c0_11], %24 {strides = array<i32>} : memref<16x128xf32, #tpu.memory_space<vmem>>, vector<16x128xf32>,
    return
  }
  func.func @transform_0(%arg0: i32) -> (i32, i32) {
    %c0_i32 = arith.constant 0 : i32
    %c0_i32_0 = arith.constant 0 : i32
    return %arg0, %c0_i32 : i32, i32
  }
  func.func @transform_1(%arg0: i32) -> (i32, i32) {
    %c0_i32 = arith.constant 0 : i32
    %c0_i32_0 = arith.constant 0 : i32
    return %arg0, %c0_i32 : i32, i32
  }
  func.func @transform_2(%arg0: i32) -> (i32, i32) {
    %c0_i32 = arith.constant 0 : i32
    %c0_i32_0 = arith.constant 0 : i32
    %c0_i32_1 = arith.constant 0 : i32
    return %c0_i32, %c0_i32_0 : i32, i32
  }
  func.func @transform_3(%arg0: i32) -> (i32, i32) {
    %c0_i32 = arith.constant 0 : i32
    %c0_i32_0 = arith.constant 0 : i32
    return %arg0, %c0_i32 : i32, i32
  }
}

</mosaic_0001>

<bundles_post_ra>
// kernel: tpu_custom_call.1
= control target key start
LH: loop header
LB: loop body
LE: loop exit
PB: predicated region body
PF: predicated region fallthrough
CT: control target
= control target key end

     0   :  { %8 = vsyncpa [#allocation3], 0  ;;  %s192_s0 = inlined_call_operand.vmem [shape: f32[16,128], index: 0, kind: input, shape index: {}]   ;;  %s193_s1 = inlined_call_operand.hbm [shape: f32[16,128], index: 1, kind: input, shape index: {}, may-alias: {1,3}]   ;;  %s194_s2 = inlined_call_operand.vmem [shape: f32[2,128], index: 2, kind: input, shape index: {}]   ;;  %s195_s3 = inlined_call_operand.hbm [shape: f32[16,128], index: 3, kind: output, shape index: {}, may-alias: {1,3}]  }
   0x1   :  { %9 = vsyncpa [#allocation4], 0  ;;  %s144_s12 = smov [#allocation2]  }
   0x2   :  { %s17_s13 = sshll.u32 %s144_s12, 4  ;;  %s18_s13 = int_to_ptr.vmem [resolvable:$true] %s17_s13 }
   0x3   :  { %s108_s14 = scalar_lea.vmem %s18_s13, 256  ;;  %p113_p1 = scmp.lt.s32.totalorder %s18_s13, %s18_s13 }
   0x4   :  { %p109_p0 = scmp.ne.s32.totalorder %s18_s13, %s108_s14  ;;  %p114_p2 = scmp.lt.s32.totalorder %s108_s14, %s108_s14 }
   0x6   :  { %p115_p3 = por %p114_p2, %p113_p1 }
   0x8   :  { %p116_p4 = pnand %p115_p3, %p109_p0 }
   0xa   :  { %119 = shalt.err (!%p116_p4)
}
   0xb   :  { %s145_s15 = smov 128   ;;  %s146_s16 = smov 8  }
   0xc   :  { %23 = dma.hbm_to_vmem [thread:$0]  %s193_s1, 256, %s18_s13, [#allocation3], %s145_s15, %s145_s15, %s146_s16  }
   0xd   :  { %140 = dma.done.wait [#allocation3], 256  }
   0xe   :  { %141 = vsyncadd [#allocation3], 4294967040  ;;  %v29_v0 = vld [vmem:[%s192_s0] sm:$0xff]  ;;  %v30_v2 = vld [vmem:[%s192_s0 + $0x8] sm:$0xff]  ;;  %s147_s25 = smov [#allocation5]  }
   0xf   :  { %v31_v1 = vld [vmem:[#allocation2] sm:$0xff]  ;;  %v32_v4 = vld [vmem:[#allocation2 + $0x8] sm:$0xff]  ;;  %s78_s26 = sshll.u32 %s147_s25, 4  ;;  %s79_s26 = int_to_ptr.vmem [resolvable:$true] %s78_s26 }
  0x10   :  { %v33_v3 = vadd.f32 %v31_v1, %v29_v0  ;;  %v34_v5 = vadd.f32 %v32_v4, %v30_v2  ;;  %v90_v21 = vld [vmem:[%s194_s2] ss:$0 sm:$0xff]  ;;  %v91_v23 = vld [vmem:[%s194_s2 + $0x1] ss:$0 sm:$0xff]  ;;  %s120_s27 = scalar_lea.vmem %s79_s26, 256  ;;  %p125_p6 = scmp.lt.s32.totalorder %s79_s26, %s79_s26 }
  0x11   :  { %p121_p5 = scmp.ne.s32.totalorder %s79_s26, %s120_s27  ;;  %p126_p7 = scmp.lt.s32.totalorder %s120_s27, %s120_s27 }
  0x12   :  { %35 = vadd.xlane.f32.xlu0 %v33_v3 }
  0x13   :  { %p127_p8 = por %p126_p7, %p125_p6 }
  0x15   :  { %p128_p9 = pnand %p127_p8, %p121_p5 }
  0x16   :  { %37 = vadd.xlane.f32.xlu0 %v34_v5 }
  0x9b   :  { %v36_v6 = vpop.xlane.xlu0 %35 }
  0x9c   :  { %v39_v7 = vmul.f32 0.0078125, %v36_v6 }
  0x9e   :  { %v41_v8 = vsub.f32 %v33_v3, %v39_v7 }
  0x9f   :  { %v38_v9 = vpop.xlane.xlu0 %37 }
  0xa0   :  { %v40_v10 = vmul.f32 0.0078125, %v38_v9  ;;  %v43_v11 = vmul.f32 %v41_v8, %v41_v8 }
  0xa2   :  { %v42_v12 = vsub.f32 %v34_v5, %v40_v10  ;;  %45 = vadd.xlane.f32.xlu1 %v43_v11 }
  0xa4   :  { %v44_v13 = vmul.f32 %v42_v12, %v42_v12 }
  0xa6   :  { %47 = vadd.xlane.f32.xlu1 %v44_v13 }
 0x12b   :  { %v46_v14 = vpop.xlane.xlu1 %45 }
 0x12c   :  { %v49_v15 = vmul.f32 0.0078125, %v46_v14 }
 0x12e   :  { %v51_v16 = vadd.f32 1e-05, %v49_v15 }
 0x12f   :  { %v48_v17 = vpop.xlane.xlu1 %47 }
 0x130   :  { %96 = vrsqrt.f32 %v51_v16  ;;  %v50_v18 = vmul.f32 0.0078125, %v48_v17 }
 0x132   :  { %v52_v19 = vadd.f32 1e-05, %v50_v18 }
 0x134   :  { %98 = vrsqrt.f32 %v52_v19 }
 0x13d   :  { %v97_v20 = vpop.eup %96 }
 0x13e   :  { %v57_v22 = vmul.f32 %v97_v20, %v41_v8 }
 0x140   :  { %v63_v24 = vmul.f32 %v90_v21, %v57_v22 }
 0x141   :  { %v99_v25 = vpop.eup %98 }
 0x142   :  { %v58_v26 = vmul.f32 %v99_v25, %v42_v12  ;;  %v69_v27 = vadd.f32 %v91_v23, %v63_v24 }
 0x144   :  { %v64_v28 = vmul.f32 %v90_v21, %v58_v26  ;;  %71 = vst [vmem:[#allocation5] sm:$0xff] %v69_v27 }
 0x146   :  { %v70_v29 = vadd.f32 %v91_v23, %v64_v28 }
 0x148   :  { %72 = vst [vmem:[#allocation5 + $0x8] sm:$0xff] %v70_v29 }
 0x149   :  { %131 = shalt.err (!%p128_p9)
}
 0x14a   :  { %84 = dma.vmem_to_hbm [thread:$0]  %s79_s26, 256, %s195_s3, [#allocation4], %s145_s15, %s145_s15, %s146_s16  }
 0x14b   :  { %142 = dma.done.wait [#allocation4], 256  }
 0x14c   :  { %143 = vsyncadd [#allocation4], 4294967040 }
 0x14d   :  { %88 = vsyncpa [#allocation3], 1 }
 0x14e   :  { %89 = vsyncpa [#allocation4], 1 }

</bundles_post_ra>
